<compile_context>
chip_gen: v5e
topology: v5e:2x2
jax: 0.10.0
libtpu: 0.0.40
codegen_flags: <defaults>
</compile_context>

<pallas_src>
import functools

import jax
import jax.numpy as jnp
from jax.experimental import pallas as pl
from jax.experimental.pallas import tpu as pltpu


def _vmem_capacity_bytes(default=64 * 1024 * 1024):
    """Best-effort VMEM capacity query; conservative (v7x-sized) fallback."""
    try:
        cap = int(pltpu.get_tpu_info().vmem_capacity_bytes)
        if cap > 0:
            return cap
    except Exception:
        pass
    return default


def _ce_zeros_kernel(x_ref, out_ref, acc_ref, *, n_rows, tile_n, steps_per_part):
    """Cross-entropy-vs-class-0 over a (tile_n, C) block, partial sum per partition.

    x_ref   : VMEM tile (tile_n, C) of logits (native dtype)
    out_ref : VMEM (1, 8, 128) partial-sum slab for this partition
    acc_ref : SMEM (1,) f32 running sum for this partition
    """
    p = pl.program_id(0)          # partition (parallel axis; one per TC on v7x)
    s = pl.program_id(1)          # step within the partition (reduction axis)

    @pl.when(s == 0)
    def _():
        acc_ref[0] = jnp.float32(0.0)

    x = x_ref[...].astype(jnp.float32)                       # (tile_n, C), f32 math

    # Numerically stable logsumexp over the class (lane) axis.
    m = jnp.max(x, axis=-1, keepdims=True)                   # (tile_n, 1)
    ssum = jnp.sum(jnp.exp(x - m), axis=-1, keepdims=True)   # (tile_n, 1)
    lse = m + jnp.log(ssum)                                  # (tile_n, 1)

    # Target class is always index 0 -> per-row CE = lse - x[:, 0].
    loss_rows = lse - x[:, 0:1]                               # (tile_n, 1)

    # Mask rows past the real batch: covers the partial last block (garbage /
    # undefined padding rows) and clamped overhang blocks.  jnp.where is a
    # select, so NaN/inf in masked rows cannot propagate.
    block_id = p * steps_per_part + s
    row_ids = block_id * tile_n + jax.lax.broadcasted_iota(jnp.int32, (tile_n, 1), 0)
    loss_rows = jnp.where(row_ids < n_rows, loss_rows, 0.0)

    # Fold the whole tile to one scalar and accumulate in SMEM (no big
    # lane-sparse VMEM accumulator, no per-step masked vld/vst).
    acc_ref[0] += jnp.sum(loss_rows)

    @pl.when(s == pl.num_programs(1) - 1)
    def _():
        out_ref[...] = jnp.full(out_ref.shape, acc_ref[0], jnp.float32)


def contrastive_loss(inputs, dummy_labels=None, *, reduction="mean", tile_n=None):
    """Pallas entry point. inputs: [N, C] logits. Returns scalar float32 loss."""
    del dummy_labels  # unused, mirrors the PyTorch module signature
    if reduction not in ("mean", "sum"):
        # TODO(synk): reduction='none' (per-row loss vector) not implemented.
        raise ValueError(f"Unsupported reduction: {reduction!r}")

    x = jnp.asarray(inputs)
    if x.dtype not in (jnp.float32, jnp.bfloat16, jnp.float16):
        x = x.astype(jnp.float32)       # e.g. f64 / int inputs -> sane TPU dtype
    N, C = x.shape
    itemsize = jnp.dtype(x.dtype).itemsize
    sub = {4: 8, 2: 16, 1: 32}[itemsize]      # sublane-packing row multiple

    # ---- tile selection (byte-budget based, generation aware) ----------------
    vmem_cap = _vmem_capacity_bytes()
    vmem_limit = max(32 * 1024 * 1024, int(0.75 * vmem_cap))   # 48 MiB v7x, 96 MiB v5e/v6e
    # Per pipeline buffer budget: multi-MiB blocks already reach ~85%+ of HBM
    # roofline; keep headroom for the double-buffered input and f32 temporaries.
    buf_budget = min(8 * 1024 * 1024, vmem_limit // 8)

    n_rounded = ((N + sub - 1) // sub) * sub
    if tile_n is None:
        tile_n = buf_budget // (C * itemsize)
        tile_n = min(tile_n, 8192, n_rounded)
    tile_n = max(sub, (min(tile_n, n_rounded) // sub) * sub)

    # ---- grid: (partitions, steps) -------------------------------------------
    nb = -(-N // tile_n)                       # number of row blocks (cdiv)
    num_parts = 2 if nb >= 2 else 1            # v7x: one partition per TensorCore
    steps = -(-nb // num_parts)

    def x_index_map(p, s):
        # Clamp so an overhang step (p*steps + s >= nb) re-reads the last real
        # block instead of issuing a fully out-of-bounds DMA; its rows are
        # masked out inside the kernel via the logical (unclamped) block id.
        return (jnp.minimum(p * steps + s, nb - 1), 0)

    kernel = functools.partial(
        _ce_zeros_kernel, n_rows=N, tile_n=tile_n, steps_per_part=steps
    )

    partials = pl.pallas_call(
        kernel,
        out_shape=jax.ShapeDtypeStruct((num_parts, 8, 128), jnp.float32),
        grid_spec=pltpu.PrefetchScalarGridSpec(
            num_scalar_prefetch=0,
            grid=(num_parts, steps),
            in_specs=[pl.BlockSpec((tile_n, C), x_index_map)],
            out_specs=pl.BlockSpec((1, 8, 128), lambda p, s: (p, 0, 0)),
            scratch_shapes=[pltpu.SMEM((1,), jnp.float32)],
        ),
        compiler_params=pltpu.CompilerParams(
            dimension_semantics=("parallel", "arbitrary"),
            vmem_limit_bytes=vmem_limit,
        ),
    )(x)

    total = jnp.sum(partials[:, 0, 0])
    if reduction == "mean":
        total = total / jnp.float32(N)
    return total


def _reference(inputs, reduction="mean"):
    """Pure-JAX reference matching nn.CrossEntropyLoss(inputs, zeros)."""
    x = jnp.asarray(inputs).astype(jnp.float32)
    lse = jax.scipy.special.logsumexp(x, axis=-1)
    per_row = lse - x[:, 0]
    return per_row.mean() if reduction == "mean" else per_row.sum()


if __name__ == "__main__":
    key = jax.random.PRNGKey(0)
    k1, k2, k3 = jax.random.split(key, 3)

    # Case 1: small batch of similarity logits, f32, default tiling.
    x1 = jax.random.normal(k1, (16, 64), dtype=jnp.float32) * 2.0
    out1 = jax.block_until_ready(contrastive_loss(x1))
    ref1 = _reference(x1)
    assert jnp.allclose(out1, ref1, rtol=1e-5, atol=1e-5), (out1, ref1)

    # Case 2: ragged batch + forced small tile -> exercises the partial-block
    # row mask, the 2-partition parallel axis, and the clamped index_map.
    x2 = jax.random.normal(k2, (22, 48), dtype=jnp.float32)
    out2 = jax.block_until_ready(contrastive_loss(x2, tile_n=8))
    ref2 = _reference(x2)
    assert jnp.allclose(out2, ref2, rtol=1e-5, atol=1e-5), (out2, ref2)

    # Case 3: bf16 streamed in native dtype, 'sum' reduction, ragged batch.
    x3 = jax.random.normal(k3, (10, 64), dtype=jnp.float32).astype(jnp.bfloat16)
    out3 = jax.block_until_ready(contrastive_loss(x3, reduction="sum"))
    ref3 = _reference(x3, reduction="sum")
    assert jnp.allclose(out3, ref3, rtol=1e-4, atol=1e-4), (out3, ref3)

    print("KERNEL_OK")
</pallas_src>

<mosaic_0001>
module attributes {stable_mosaic.version = 11 : i64} {
  func.func @_ce_zeros_kernel(%arg0: i32, %arg1: i32, %arg2: memref<16x64xf32, #tpu.memory_space<vmem>>, %arg3: memref<1x8x128xf32, #tpu.memory_space<vmem>>, %arg4: memref<1xf32, #tpu.memory_space<smem>>) attributes {dimension_semantics = [#tpu.dimension_semantics<parallel>, #tpu.dimension_semantics<arbitrary>], iteration_bounds = array<i64: 1, 1>, scalar_prefetch = 0 : i64, scratch_operands = 1 : i64, tpu.core_type = #tpu.core_type<tc>, window_params = [{transform_indices = @transform_0, window_bounds = array<i64: 16, 64>}, {transform_indices = @transform_1, window_bounds = array<i64: 1, 8, 128>}]} {
    %c0_i32 = arith.constant 0 : i32
    %0 = arith.cmpi eq, %arg1, %c0_i32 : i32
    %1 = arith.extui %0 : i1 to i32
    %c0_i32_0 = arith.constant 0 : i32
    %2 = arith.cmpi ne, %1, %c0_i32_0 : i32
    scf.if %2 {
      %cst_10 = arith.constant 0.000000e+00 : f32
      %c0_11 = arith.constant 0 : index
      %35 = memref.load %arg4[%c0_11] : memref<1xf32, #tpu.memory_space<smem>>
      memref.store %cst_10, %arg4[%c0_11] : memref<1xf32, #tpu.memory_space<smem>>
    } else {
    }
    %c0 = arith.constant 0 : index
    %c0_1 = arith.constant 0 : index
    %3 = vector.load %arg2[%c0, %c0_1] : memref<16x64xf32, #tpu.memory_space<vmem>>, vector<16x64xf32>
    %cst = arith.constant dense<0xFF800000> : vector<16xf32>
    %4 = vector.multi_reduction <maximumf>, %3, %cst [1] : vector<16x64xf32> to vector<16xf32>
    %5 = vector.shape_cast %4 : vector<16xf32> to vector<16x1xf32>
    %6 = vector.broadcast %5 : vector<16x1xf32> to vector<16x64xf32>
    %7 = arith.subf %3, %6 : vector<16x64xf32>
    %8 = math.exp %7 : vector<16x64xf32>
    %cst_2 = arith.constant dense<0.000000e+00> : vector<16xf32>
    %9 = vector.multi_reduction <add>, %8, %cst_2 [1] : vector<16x64xf32> to vector<16xf32>
    %10 = vector.shape_cast %9 : vector<16xf32> to vector<16x1xf32>
    %11 = math.log %10 : vector<16x1xf32>
    %12 = arith.addf %5, %11 : vector<16x1xf32>
    %13 = vector.extract_strided_slice %3 {offsets = [0, 0], sizes = [16, 1], strides = [1, 1]} : vector<16x64xf32> to vector<16x1xf32>
    %14 = arith.subf %12, %13 : vector<16x1xf32>
    %c1_i32 = arith.constant 1 : i32
    %15 = arith.muli %arg0, %c1_i32 : i32
    %16 = arith.addi %15, %arg1 : i32
    %c16_i32 = arith.constant 16 : i32
    %17 = arith.muli %16, %c16_i32 : i32
    %18 = tpu.iota {dimensions = array<i32: 0>} : vector<16x1xi32>
    %19 = vector.broadcast %17 : i32 to vector<16x1xi32>
    %20 = arith.addi %19, %18 : vector<16x1xi32>
    %c16_i32_3 = arith.constant 16 : i32
    %21 = vector.broadcast %c16_i32_3 : i32 to vector<16x1xi32>
    %22 = arith.cmpi slt, %20, %21 : vector<16x1xi32>
    %cst_4 = arith.constant 0.000000e+00 : f32
    %23 = vector.broadcast %cst_4 : f32 to vector<16x1xf32>
    %24 = arith.select %22, %14, %23 : vector<16x1xi1>, vector<16x1xf32>
    %c0_5 = arith.constant 0 : index
    %25 = memref.load %arg4[%c0_5] : memref<1xf32, #tpu.memory_space<smem>>
    %26 = vector.shape_cast %24 : vector<16x1xf32> to vector<1x16x1xf32>
    %cst_6 = arith.constant dense<0.000000e+00> : vector<1xf32>
    %27 = vector.multi_reduction <add>, %26, %cst_6 [1, 2] : vector<1x16x1xf32> to vector<1xf32>
    %28 = vector.shape_cast %27 : vector<1xf32> to vector<1x1x1xf32>
    %29 = vector.extract %28[0, 0, 0] : f32 from vector<1x1x1xf32>
    %30 = arith.addf %25, %29 : f32
    %c0_7 = arith.constant 0 : index
    %31 = memref.load %arg4[%c0_7] : memref<1xf32, #tpu.memory_space<smem>>
    memref.store %30, %arg4[%c0_7] : memref<1xf32, #tpu.memory_space<smem>>
    %c0_i32_8 = arith.constant 0 : i32
    %32 = arith.cmpi eq, %arg1, %c0_i32_8 : i32
    %33 = arith.extui %32 : i1 to i32
    %c0_i32_9 = arith.constant 0 : i32
    %34 = arith.cmpi ne, %33, %c0_i32_9 : i32
    scf.if %34 {
      %c0_10 = arith.constant 0 : index
      %35 = memref.load %arg4[%c0_10] : memref<1xf32, #tpu.memory_space<smem>>
      %36 = vector.broadcast %35 : f32 to vector<1x8x128xf32>
      %c0_11 = arith.constant 0 : index
      %c0_12 = arith.constant 0 : index
      %c0_13 = arith.constant 0 : index
      %37 = vector.load %arg3[%c0_11, %c0_12, %c0_13] : memref<1x8x128xf32, #tpu.memory_space<vmem>>, vector<1x8x128xf32>
      tpu.vector_store %arg3[%c0_11, %c0_12, %c0_13], %36 {strides = array<i32>} : memref<1x8x128xf32, #tpu.memory_space<vmem>>, vector<1x8x128xf32>,
    } else {
    }
    return
  }
  func.func @transform_0(%arg0: i32, %arg1: i32) -> (i32, i32) {
    %c1_i32 = arith.constant 1 : i32
    %0 = arith.muli %arg0, %c1_i32 : i32
    %1 = arith.addi %0, %arg1 : i32
    %c0_i32 = arith.constant 0 : i32
    %2 = arith.minsi %1, %c0_i32 : i32
    %c0_i32_0 = arith.constant 0 : i32
    %c0_i32_1 = arith.constant 0 : i32
    return %2, %c0_i32_0 : i32, i32
  }
  func.func @transform_1(%arg0: i32, %arg1: i32) -> (i32, i32, i32) {
    %c0_i32 = arith.constant 0 : i32
    %c0_i32_0 = arith.constant 0 : i32
    %c0_i32_1 = arith.constant 0 : i32
    return %arg0, %c0_i32, %c0_i32_0 : i32, i32, i32
  }
}

</mosaic_0001>

<bundles_post_ra>
// kernel: tpu_custom_call.1
= control target key start
LH: loop header
LB: loop body
LE: loop exit
PB: predicated region body
PF: predicated region fallthrough
CT: control target
= control target key end

     0   :  { %6 = vsyncpa [#allocation4], 0  ;;  %s214_s0 = inlined_call_operand.hbm [shape: f32[16,64], index: 0, kind: input, shape index: {}]   ;;  %s215_s1 = inlined_call_operand.hbm [shape: f32[1,8,128], index: 1, kind: output, shape index: {}]  }
   0x1   :  { %7 = vsyncpa [#allocation5], 0  ;;  %s18_s8 = sshll.u32 %s214_s0, 4  ;;  %s190_s9 = smov [#allocation3]   ;;  %s19_s8 = int_to_ptr.hbm [resolvable:$true] %s18_s8 }
   0x2   :  { %s20_s10 = sshll.u32 %s190_s9, 4  ;;  %s191_s11 = smov 128   ;;  %s21_s10 = int_to_ptr.vmem [resolvable:$true] %s20_s10 }
   0x3   :  { %s192_s12 = smov 8  }
   0x4   :  { %26 = dma.hbm_to_vmem [thread:$0]  %s19_s8, 256, %s21_s10, [#allocation4], %s191_s11, %s191_s11, %s192_s12  }
   0x5   :  { %186 = dma.done.wait [#allocation4], 256  }
   0x6   :  { %187 = vsyncadd [#allocation4], 4294967040  ;;  %vm43_vm0 = vcmask 523264   ;;  %v41_v0 = vld [vmem:[#allocation3] sm:$0xff]  ;;  %v42_v2 = vld [vmem:[#allocation3 + $0x8] sm:$0xff]  ;;  %vm83_vm1 = vcmask 7168  }
   0x7   :  { %v44_v1 = vsel %vm43_vm0, %v41_v0, -inf  ;;  %v47_v3 = vsel %vm43_vm0, %v42_v2, -inf  ;;  %s193_s0 = smov [#allocation6]   ;;  %s112_s16 = sshll.u32 %s215_s1, 4  ;;  %s113_s16 = int_to_ptr.hbm [resolvable:$true] %s112_s16 }
   0x8   :  { %45 = vmax.xlane.f32.xlu0 %v44_v1  ;;  %s110_s13 = sshll.u32 %s193_s0, 4  ;;  %s111_s13 = int_to_ptr.vmem [resolvable:$true] %s110_s13 }
  0x10   :  { %48 = vmax.xlane.f32.xlu0 %v47_v3 }
  0x7b   :  { %v46_v4 = vpop.xlane.xlu0 %45 }
  0x7c   :  { %v50_v5 = vsub.f32 %v41_v0, %v46_v4 }
  0x7e   :  { %v52_v6 = vmul.f32 1.442695, %v50_v5 }
  0x80   :  { %130 = vpow2.f32 %v52_v6 }
  0x83   :  { %v49_v7 = vpop.xlane.xlu0 %48 }
  0x84   :  { %v51_v8 = vsub.f32 %v42_v2, %v49_v7 }
  0x86   :  { %v131_v9 = vpop.eup %130  ;;  %v54_v10 = vmul.f32 1.442695, %v51_v8 }
  0x87   :  { %v56_v11 = vsel %vm43_vm0, %v131_v9, 0.0 }
  0x88   :  { %132 = vpow2.f32 %v54_v10  ;;  %57 = vadd.xlane.f32.xlu1 %v56_v11 }
  0x8e   :  { %v133_v12 = vpop.eup %132 }
  0x8f   :  { %v59_v13 = vsel %vm43_vm0, %v133_v12, 0.0 }
  0x90   :  { %60 = vadd.xlane.f32.xlu1 %v59_v13 }
  0xfb   :  { %v58_v14 = vpop.xlane.xlu1 %57 }
  0xfc   :  { %134 = vlog2.f32 %v58_v14 }
 0x102   :  { %v135_v15 = vpop.eup %134 }
 0x103   :  { %v61_v16 = vpop.xlane.xlu1 %60  ;;  %v63_v17 = vmul.f32 0.6931472, %v135_v15 }
 0x104   :  { %136 = vlog2.f32 %v61_v16 }
 0x105   :  { %v66_v18 = vadd.f32 %v63_v17, %v46_v4 }
 0x107   :  { %v68_v22 = vsub.f32 %v66_v18, %v41_v0 }
 0x109   :  { %v84_v24 = vsel %vm83_vm1, %v68_v22, 0.0 }
 0x10a   :  { %v137_v19 = vpop.eup %136 }
 0x10b   :  { %v65_v20 = vmul.f32 0.6931472, %v137_v19 }
 0x10d   :  { %v67_v21 = vadd.f32 %v65_v20, %v49_v7 }
 0x10f   :  { %v69_v23 = vsub.f32 %v67_v21, %v42_v2 }
 0x111   :  { %v85_v25 = vsel %vm83_vm1, %v69_v23, 0.0 }
 0x112   :  { %v86_v26 = vadd.f32 %v85_v25, %v84_v24 }
 0x114   :  { %87 = vadd.xlane.f32.xlu2 %v86_v26 }
 0x187   :  { %v88_v27 = vpop.xlane.xlu2 %87 }
 0x188   :  { %v89_v28 = vrot.slane %v88_v27, 4 }
 0x18a   :  { %v90_v29 = vadd.f32 %v89_v28, %v88_v27 }
 0x18c   :  { %v91_v30 = vrot.slane %v90_v29, 2 }
 0x18e   :  { %v92_v31 = vadd.f32 %v91_v30, %v90_v29 }
 0x190   :  { %v93_v32 = vrot.slane %v92_v31, 1 }
 0x192   :  { %v94_v33 = vadd.f32 %v93_v32, %v92_v31 }
 0x194   :  { %124 = vpush %v94_v33 }
 0x1c5   :  { %s125_s17 = spop %124 }
 0x1c6   :  { %v103_v34 = vstv %s125_s17 }
 0x1c7   :  { %104 = vst [vmem:[#allocation6] sm:$0xff] %v103_v34 }
 0x1c8   :  { %115 = dma.vmem_to_hbm [thread:$0]  %s111_s13, 128, %s113_s16, [#allocation5]  }
 0x1c9   :  { %188 = dma.done.wait [#allocation5], 128  }
 0x1ca   :  { %189 = vsyncadd [#allocation5], 4294967168 }
 0x1cb   :  { %120 = vsyncpa [#allocation4], 1 }
 0x1cc   :  { %121 = vsyncpa [#allocation5], 1 }

</bundles_post_ra>
